<compile_context>
chip_gen: v6e
topology: v6e:2x2x1
jax: 0.10.0
libtpu: 0.0.40
codegen_flags: <defaults>
</compile_context>

<pallas_src>
import jax
import jax.numpy as jnp
from jax.experimental import pallas as pl
from jax.experimental.pallas import tpu as pltpu


# ----------------------------------------------------------------------------
# Kernels
# ----------------------------------------------------------------------------
def _fm_kernel_reduce(x_ref, o_ref):
    # x_ref: (F, D, TB) in VMEM; o_ref: (1, TB) lane-dense output slab.
    x = x_ref[...]
    # f32 accumulation; elementwise square in the input dtype (no full upcast).
    s = jnp.sum(x, axis=0, dtype=jnp.float32)          # (D, TB) sum over fields
    ssq = jnp.sum(x * x, axis=0, dtype=jnp.float32)    # (D, TB)
    ix = s * s - ssq                                   # (D, TB)
    # Sublane (XLU) reduce over D -> (1, TB).
    o_ref[...] = (0.5 * jnp.sum(ix, axis=0, keepdims=True)).astype(o_ref.dtype)


def _fm_kernel_noreduce(x_ref, o_ref):
    # x_ref: (F, D, TB) in VMEM; o_ref: (D, TB).
    x = x_ref[...]
    s = jnp.sum(x, axis=0, dtype=jnp.float32)
    ssq = jnp.sum(x * x, axis=0, dtype=jnp.float32)
    o_ref[...] = (0.5 * (s * s - ssq)).astype(o_ref.dtype)


# ----------------------------------------------------------------------------
# Wrapper: FactorizationMachine.forward
# ----------------------------------------------------------------------------
def factorization_machine(x: jax.Array, reduce_sum: bool = True,
                          block_b: int = 512) -> jax.Array:
    """x: (batch, num_fields, embed_dim). Returns (B, 1) or (B, D), dtype of x."""
    B, F, D = x.shape
    out_dtype = x.dtype

    # Lane-dense layout: batch on the last (lane) axis.  Layout plumbing only.
    xt = jnp.transpose(x, (1, 2, 0))                      # (F, D, B)

    if B <= block_b:
        tb, bp, num_tiles = B, B, 1                       # full-extent block
    else:
        assert block_b % 128 == 0, "batch tile must be a multiple of 128 lanes"
        tb = block_b
        num_tiles = -(-B // tb)
        bp = num_tiles * tb
        if bp != B:
            # Zero padding is exact: FM of an all-zero batch row is zero.
            xt = jnp.pad(xt, ((0, 0), (0, 0), (0, bp - B)))

    in_spec = pl.BlockSpec((F, D, tb), lambda i: (0, 0, i))

    if reduce_sum:
        kernel = _fm_kernel_reduce
        out_shape = jax.ShapeDtypeStruct((1, bp), out_dtype)
        out_spec = pl.BlockSpec((1, tb), lambda i: (0, i))
        out_bytes = bp * out_dtype.itemsize
    else:
        kernel = _fm_kernel_noreduce
        out_shape = jax.ShapeDtypeStruct((D, bp), out_dtype)
        out_spec = pl.BlockSpec((D, tb), lambda i: (0, i))
        out_bytes = D * bp * out_dtype.itemsize

    out = pl.pallas_call(
        kernel,
        out_shape=out_shape,
        grid=(num_tiles,),
        in_specs=[in_spec],
        out_specs=out_spec,
        compiler_params=pltpu.CompilerParams(
            dimension_semantics=("parallel",),            # megacore on v7x
            vmem_limit_bytes=32 * 1024 * 1024,
        ),
        cost_estimate=pl.CostEstimate(
            flops=4 * B * F * D,
            transcendentals=0,
            bytes_accessed=int(x.size) * x.dtype.itemsize + int(out_bytes),
        ),
    )(xt)

    if reduce_sum:
        return out[0, :B].reshape(B, 1)
    return out[:, :B].T


# ----------------------------------------------------------------------------
# Full _FactorizationMachineModel.forward (last_dim == 1)
# ----------------------------------------------------------------------------
def fm_model_forward(idx, emb_table, lin_table, lin_bias, offsets,
                     block_b: int = 512):
    """idx: (B, F) int32 feature ids.  Returns (B,) float."""
    ids = idx + offsets[None, :]                          # (B, F)
    # TODO(synk): data-dependent embedding gathers (FeaturesEmbedding /
    # FeaturesLinear lookups) stay in XLA; only the FM reduction is a kernel.
    emb = jnp.take(emb_table, ids, axis=0)                # (B, F, D)
    linear = jnp.sum(jnp.take(lin_table, ids, axis=0), axis=1) + lin_bias  # (B, 1)
    fm = factorization_machine(emb, reduce_sum=True, block_b=block_b)      # (B, 1)
    # TODO(synk): optional last_classifier (last_dim != 1) not implemented;
    # the module default last_dim=1 path is reproduced here.
    return jnp.squeeze(linear + fm, axis=1)               # (B,)


# ----------------------------------------------------------------------------
# Pure-JAX references
# ----------------------------------------------------------------------------
def _fm_reference(x, reduce_sum=True):
    square_of_sum = jnp.sum(x, axis=1) ** 2
    sum_of_square = jnp.sum(x ** 2, axis=1)
    ix = square_of_sum - sum_of_square
    if reduce_sum:
        ix = jnp.sum(ix, axis=1, keepdims=True)
    return 0.5 * ix


def _model_reference(idx, emb_table, lin_table, lin_bias, offsets):
    ids = idx + offsets[None, :]
    emb = emb_table[ids]
    linear = jnp.sum(lin_table[ids], axis=1) + lin_bias
    return jnp.squeeze(linear + _fm_reference(emb, True), axis=1)


if __name__ == "__main__":
    key = jax.random.PRNGKey(0)
    k1, k2, k3, k4 = jax.random.split(key, 4)

    # --- small FM check (module-consistent shapes) ---
    B, F, D = 2, 4, 16
    x = jax.random.normal(k1, (B, F, D), dtype=jnp.float32)

    out = jax.block_until_ready(factorization_machine(x, reduce_sum=True))
    ref = _fm_reference(x, True)
    assert out.shape == (B, 1), out.shape
    assert jnp.allclose(out, ref, atol=1e-5, rtol=1e-5)

    out2 = jax.block_until_ready(factorization_machine(x, reduce_sum=False))
    ref2 = _fm_reference(x, False)
    assert out2.shape == (B, D), out2.shape
    assert jnp.allclose(out2, ref2, atol=1e-5, rtol=1e-5)

    # --- exercise the tiled + padded path (multiple grid steps, B % TB != 0) ---
    Bt = 300
    xt_big = jax.random.normal(k2, (Bt, F, D), dtype=jnp.float32)
    out3 = jax.block_until_ready(
        factorization_machine(xt_big, reduce_sum=True, block_b=128))
    assert out3.shape == (Bt, 1)
    assert jnp.allclose(out3, _fm_reference(xt_big, True), atol=1e-5, rtol=1e-5)

    # --- full model forward (_FactorizationMachineModel, last_dim == 1) ---
    field_dims = jnp.array([10, 20, 30, 40], dtype=jnp.int32)   # F = 4 fields
    V = int(jnp.sum(field_dims))
    offsets = jnp.concatenate(
        [jnp.zeros((1,), jnp.int32), jnp.cumsum(field_dims)[:-1]]).astype(jnp.int32)
    emb_table = 0.1 * jax.random.normal(k3, (V, D), dtype=jnp.float32)
    lin_table = 0.1 * jax.random.normal(k4, (V, 1), dtype=jnp.float32)
    lin_bias = jnp.zeros((1,), jnp.float32)
    # (B=2, F=4) ids, each within its field's vocab size.
    idx = jnp.stack([
        jnp.array([3, 5], jnp.int32),    # field 0  (< 10)
        jnp.array([7, 11], jnp.int32),   # field 1  (< 20)
        jnp.array([2, 29], jnp.int32),   # field 2  (< 30)
        jnp.array([0, 39], jnp.int32),   # field 3  (< 40)
    ], axis=1)

    y = jax.block_until_ready(
        fm_model_forward(idx, emb_table, lin_table, lin_bias, offsets))
    y_ref = _model_reference(idx, emb_table, lin_table, lin_bias, offsets)
    assert y.shape == (B,), y.shape
    assert jnp.allclose(y, y_ref, atol=1e-5, rtol=1e-5)

    print("KERNEL_OK")
</pallas_src>

<mosaic_0001>
module attributes {stable_mosaic.version = 11 : i64} {
  func.func @_fm_kernel_reduce(%arg0: i32, %arg1: memref<4x16x2xf32, #tpu.memory_space<vmem>>, %arg2: memref<1x2xf32, #tpu.memory_space<vmem>>) attributes {dimension_semantics = [#tpu.dimension_semantics<parallel>], iteration_bounds = array<i64: 1>, scalar_prefetch = 0 : i64, scratch_operands = 0 : i64, tpu.core_type = #tpu.core_type<tc>, window_params = [{transform_indices = @transform_0, window_bounds = array<i64: 4, 16, 2>}, {transform_indices = @transform_1, window_bounds = array<i64: 1, 2>}]} {
    %c0 = arith.constant 0 : index
    %c0_0 = arith.constant 0 : index
    %c0_1 = arith.constant 0 : index
    %0 = vector.load %arg1[%c0, %c0_0, %c0_1] : memref<4x16x2xf32, #tpu.memory_space<vmem>>, vector<4x16x2xf32>
    %cst = arith.constant dense<0.000000e+00> : vector<16x2xf32>
    %1 = vector.multi_reduction <add>, %0, %cst [0] : vector<4x16x2xf32> to vector<16x2xf32>
    %2 = arith.mulf %0, %0 : vector<4x16x2xf32>
    %cst_2 = arith.constant dense<0.000000e+00> : vector<16x2xf32>
    %3 = vector.multi_reduction <add>, %2, %cst_2 [0] : vector<4x16x2xf32> to vector<16x2xf32>
    %4 = arith.mulf %1, %1 : vector<16x2xf32>
    %5 = arith.subf %4, %3 : vector<16x2xf32>
    %cst_3 = arith.constant dense<0.000000e+00> : vector<2xf32>
    %6 = vector.multi_reduction <add>, %5, %cst_3 [0] : vector<16x2xf32> to vector<2xf32>
    %7 = vector.shape_cast %6 : vector<2xf32> to vector<1x2xf32>
    %cst_4 = arith.constant 5.000000e-01 : f32
    %8 = vector.broadcast %cst_4 : f32 to vector<1x2xf32>
    %9 = arith.mulf %8, %7 : vector<1x2xf32>
    %c0_5 = arith.constant 0 : index
    %c0_6 = arith.constant 0 : index
    %10 = vector.load %arg2[%c0_5, %c0_6] : memref<1x2xf32, #tpu.memory_space<vmem>>, vector<1x2xf32>
    tpu.vector_store %arg2[%c0_5, %c0_6], %9 {strides = array<i32>} : memref<1x2xf32, #tpu.memory_space<vmem>>, vector<1x2xf32>,
    return
  }
  func.func @transform_0(%arg0: i32) -> (i32, i32, i32) {
    %c0_i32 = arith.constant 0 : i32
    %c0_i32_0 = arith.constant 0 : i32
    %c0_i32_1 = arith.constant 0 : i32
    return %c0_i32, %c0_i32_0, %arg0 : i32, i32, i32
  }
  func.func @transform_1(%arg0: i32) -> (i32, i32) {
    %c0_i32 = arith.constant 0 : i32
    %c0_i32_0 = arith.constant 0 : i32
    return %c0_i32, %arg0 : i32, i32
  }
}

</mosaic_0001>

<bundles_post_ra>
// kernel: tpu_custom_call.1
= control target key start
LH: loop header
LB: loop body
LE: loop exit
PB: predicated region body
PF: predicated region fallthrough
CT: control target
= control target key end

     0   :  { %vm17_vm0 = vcmask 15360   ;;  %s163_s0 = inlined_call_operand.vmem [shape: f32[4,16,2], index: 0, kind: input, shape index: {}]   ;;  %s164_s1 = inlined_call_operand.hbm [shape: f32[1,2], index: 1, kind: output, shape index: {}]  }
   0x1   :  { %v9_v0 = vld [vmem:[%s163_s0] sm:$0xff]  ;;  %v10_v1 = vld [vmem:[%s163_s0 + $0x8] sm:$0xff]  ;;  %v11_v2 = vld [vmem:[%s163_s0 + $0x10] sm:$0xff] }
   0x2   :  { %v12_v3 = vld [vmem:[%s163_s0 + $0x18] sm:$0xff]  ;;  %v13_v4 = vld [vmem:[%s163_s0 + $0x20] sm:$0xff]  ;;  %v14_v5 = vld [vmem:[%s163_s0 + $0x28] sm:$0xff]  ;;  %v18_v6 = vsel %vm17_vm0, %v9_v0, 0.0  ;;  %v19_v7 = vsel %vm17_vm0, %v11_v2, 0.0  ;;  %v25_v8 = vsel %vm17_vm0, %v10_v1, 0.0  ;;  %v32_v9 = vmul.f32 %v9_v0, %v9_v0 }
   0x3   :  { %v15_v10 = vld [vmem:[%s163_s0 + $0x30] sm:$0xff]  ;;  %v16_v11 = vld [vmem:[%s163_s0 + $0x38] sm:$0xff]  ;;  %v20_v12 = vadd.f32 %v19_v7, %v18_v6  ;;  %v21_v13 = vsel %vm17_vm0, %v13_v4, 0.0  ;;  %v26_v14 = vsel %vm17_vm0, %v12_v3, 0.0  ;;  %v28_v15 = vsel %vm17_vm0, %v14_v5, 0.0 }
   0x4   :  { %v23_v16 = vsel %vm17_vm0, %v15_v10, 0.0  ;;  %v27_v17 = vadd.f32 %v26_v14, %v25_v8  ;;  %v30_v18 = vsel %vm17_vm0, %v16_v11, 0.0  ;;  %v33_v19 = vmul.f32 %v10_v1, %v10_v1 }
   0x5   :  { %6 = vsyncpa [#allocation3], 0  ;;  %v22_v20 = vadd.f32 %v21_v13, %v20_v12  ;;  %v34_v21 = vmul.f32 %v11_v2, %v11_v2  ;;  %v35_v22 = vmul.f32 %v12_v3, %v12_v3  ;;  %v36_v23 = vmul.f32 %v13_v4, %v13_v4  ;;  %s107_s0 = smov [#allocation2]  }
   0x6   :  { %v29_v24 = vadd.f32 %v28_v15, %v27_v17  ;;  %v37_v25 = vmul.f32 %v14_v5, %v14_v5  ;;  %v38_v26 = vmul.f32 %v15_v10, %v15_v10  ;;  %v39_v27 = vmul.f32 %v16_v11, %v16_v11  ;;  %s76_s22 = sshll.u32 %s107_s0, 4  ;;  %s77_s22 = int_to_ptr.vmem [resolvable:$true] %s76_s22 }
   0x7   :  { %v24_v28 = vadd.f32 %v23_v16, %v22_v20  ;;  %v40_v29 = vsel %vm17_vm0, %v32_v9, 0.0  ;;  %v41_v30 = vsel %vm17_vm0, %v34_v21, 0.0  ;;  %v43_v31 = vsel %vm17_vm0, %v36_v23, 0.0  ;;  %s85_s23 = scalar_lea.vmem %s77_s22, 16  ;;  %s89_s24 = scalar_lea.vmem %s77_s22, 32 }
   0x8   :  { %v31_v32 = vadd.f32 %v30_v18, %v29_v24  ;;  %v42_v33 = vadd.f32 %v41_v30, %v40_v29  ;;  %v47_v34 = vsel %vm17_vm0, %v33_v19, 0.0  ;;  %v45_v35 = vsel %vm17_vm0, %v38_v26, 0.0  ;;  %p86_p0 = scmp.ne.s32.totalorder %s77_s22, %s85_s23  ;;  %p90_p1 = scmp.lt.s32.totalorder %s77_s22, %s77_s22 }
   0x9   :  { %v48_v36 = vsel %vm17_vm0, %v35_v22, 0.0  ;;  %v50_v37 = vsel %vm17_vm0, %v37_v25, 0.0  ;;  %v54_v40 = vmul.f32 %v24_v28, %v24_v28  ;;  %v52_v41 = vsel %vm17_vm0, %v39_v27, 0.0  ;;  %p91_p2 = scmp.lt.s32.totalorder %s89_s24, %s85_s23 }
   0xa   :  { %v44_v38 = vadd.f32 %v43_v31, %v42_v33  ;;  %v49_v39 = vadd.f32 %v48_v36, %v47_v34  ;;  %v55_v44 = vmul.f32 %v31_v32, %v31_v32  ;;  %vm68_vm1 = vcmask 8192  }
   0xb   :  { %p92_p3 = por %p91_p2, %p90_p1 }
   0xc   :  { %v46_v42 = vadd.f32 %v45_v35, %v44_v38  ;;  %v51_v43 = vadd.f32 %v50_v37, %v49_v39 }
   0xd   :  { %p93_p4 = pnand %p92_p3, %p86_p0 }
   0xe   :  { %v53_v45 = vadd.f32 %v52_v41, %v51_v43  ;;  %v56_v46 = vsub.f32 %v54_v40, %v46_v42 }
  0x10   :  { %v57_v47 = vsub.f32 %v55_v44, %v53_v45  ;;  %v58_v48 = vsel %vm17_vm0, %v56_v46, 0.0 }
  0x12   :  { %v59_v49 = vsel %vm17_vm0, %v57_v47, 0.0 }
  0x13   :  { %v60_v50 = vadd.f32 %v59_v49, %v58_v48 }
  0x15   :  { %v61_v51 = vrot.slane %v60_v50, 4 }
  0x17   :  { %v62_v52 = vadd.f32 %v61_v51, %v60_v50 }
  0x19   :  { %v63_v53 = vrot.slane %v62_v52, 2 }
  0x1b   :  { %v64_v54 = vadd.f32 %v63_v53, %v62_v52 }
  0x1d   :  { %v65_v55 = vrot.slane %v64_v54, 1 }
  0x1f   :  { %v66_v56 = vadd.f32 %v65_v55, %v64_v54 }
  0x21   :  { %v67_v57 = vmul.f32 0.5, %v66_v56 }
  0x23   :  { %69 = vst.msk [vmem:[#allocation2] sm:$0x1] %vm68_vm1, %v67_v57 }
  0x24   :  { %96 = shalt.err (!%p93_p4)
}
  0x25   :  { %79 = dma.vmem_to_hbm [thread:$0]  %s77_s22, 16, %s164_s1, [#allocation3]  }
  0x26   :  { %105 = dma.done.wait [#allocation3], 16  }
  0x27   :  { %106 = vsyncadd [#allocation3], 4294967280 }
  0x28   :  { %83 = vsyncpa [#allocation3], 1 }

</bundles_post_ra>
